<compile_context>
chip_gen: v7x
topology: tpu7x:2x2x1
jax: 0.10.0
libtpu: 0.0.40
codegen_flags: <defaults>
</compile_context>

<pallas_src>
import jax
import jax.numpy as jnp
from jax.experimental import pallas as pl
from jax.experimental.pallas import tpu as pltpu


def _cross_encoding_pooler_kernel(offs_ref,    # SMEM scalar-prefetch: [B] int32 sequence start offsets
                                  hs_ref,      # HBM (pl.ANY): [T, H] packed hidden states (f32)
                                  wp_ref,      # VMEM: [tk, H] pooler dense weight K-tile (bf16)
                                  bp_ref,      # VMEM: [1, H] pooler dense bias (f32)
                                  wc_ref,      # VMEM: [1, H] classifier weight row (f32)
                                  bc_ref,      # VMEM: [1, 1] classifier bias (f32)
                                  out_ref,     # VMEM: [B_pad, 1] sigmoid scores (f32)
                                  cls_f32,     # VMEM scratch: [B_pad, H] gathered CLS rows (f32, DMA dst)
                                  cls_bf16,    # VMEM scratch: [B_pad, H] CLS rows cast to bf16 (MXU operand)
                                  acc,         # VMEM scratch: [B_pad, H] f32 matmul accumulator
                                  sem):        # DMA semaphores: [B]
    k = pl.program_id(0)
    n_k = pl.num_programs(0)
    B = offs_ref.shape[0]
    B_pad, H = cls_f32.shape
    T = hs_ref.shape[0]
    tk = wp_ref.shape[0]

    # ---- k == 0 prologue: init accumulator, gather the B CLS rows from HBM. ----
    # Running the gather inside the first grid step lets the row DMAs overlap the
    # BlockSpec prefetch of weight tile k==1.
    @pl.when(k == 0)
    def _prologue():
        acc[...] = jnp.zeros_like(acc)
        # Zero the sublane-padding rows so they stay finite (sliced off in wrapper).
        if B_pad > B:
            cls_f32[pl.ds(B, B_pad - B), :] = jnp.zeros((B_pad - B, H), jnp.float32)
        # Issue all row DMAs first so they overlap each other, then wait.
        copies = []
        for b in range(B):                          # B is static -> trace-time unroll
            off = jnp.minimum(offs_ref[b], T - 1)   # clamp: no OOB DMA on malformed prompt_lens
            cp = pltpu.make_async_copy(
                hs_ref.at[pl.ds(off, 1), :],
                cls_f32.at[pl.ds(b, 1), :],
                sem.at[b],
            )
            cp.start()
            copies.append(cp)
        for cp in copies:
            cp.wait()
        # Cast once; all K steps read the bf16 copy (MXU bf16 x bf16, f32 acc).
        cls_bf16[...] = cls_f32[...].astype(jnp.bfloat16)

    # ---- Streamed pooler matmul: accumulate this K-tile's partial product. ----
    start = pl.multiple_of(k * tk, tk)
    a_blk = cls_bf16[:, pl.ds(start, tk)]                               # (B_pad, tk) bf16
    acc[...] += jnp.dot(a_blk, wp_ref[...],
                        preferred_element_type=jnp.float32)             # (B_pad, H) f32

    # ---- k == last epilogue: bias + tanh, classifier, sigmoid, store. ----
    @pl.when(k == n_k - 1)
    def _epilogue():
        pooled = jnp.tanh(acc[...] + bp_ref[...])                       # (B_pad, H)
        # Linear(H, 1) as VPU multiply + lane reduction (no 1-lane MXU pass).
        logits = jnp.sum(pooled * wc_ref[...], axis=-1, keepdims=True) + bc_ref[...]
        out_ref[...] = jax.nn.sigmoid(logits)                           # (B_pad, 1)


def _pick_k_tile(H):
    """K (reduction) tile for streaming the pooler weight.

    Lane-aligned H (multiple of 128): largest 128-multiple divisor <= 512, so the
    bf16 weight tile is at most ~0.5*H KiB and double-buffers comfortably.
    Otherwise: single full-extent block (exempt from the (8,128) rule).
    """
    if H % 128 != 0:
        return H
    for tk in (512, 384, 256, 128):
        if tk <= H and H % tk == 0:
            return tk
    return 128


def cross_encoding_pooler(hidden_states, prompt_lens, w_pool, b_pool, w_cls, b_cls,
                          k_tile=None):
    """Pallas implementation of CrossEncodingPooler.forward.

    hidden_states: [T, H] float32 packed tokens of all sequences.
    prompt_lens:   [B] int32 lengths (sum == T).
    w_pool/b_pool: BertPooler dense Linear(H, H) params.
    w_cls/b_cls:   classifier Linear(H, 1) params.
    Returns scores: [B] float32 (== EmbeddingPoolerOutput.embeddings).
    """
    T, H = hidden_states.shape
    B = int(prompt_lens.shape[0])
    # Pad batch to the f32 sublane multiple; do NOT grow beyond what's needed
    # (kernel is weight-stream bound, not MXU bound).
    B_pad = max(8, ((B + 7) // 8) * 8)

    tk = _pick_k_tile(H) if k_tile is None else int(k_tile)
    assert H % tk == 0, "k_tile must divide the hidden size"
    k_tiles = H // tk

    # Sequence start offsets (the `offset += prompt_len` loop in the PyTorch code).
    offsets = jnp.concatenate(
        [jnp.zeros((1,), jnp.int32), jnp.cumsum(prompt_lens.astype(jnp.int32))[:-1]]
    ).astype(jnp.int32)

    out = pl.pallas_call(
        _cross_encoding_pooler_kernel,
        out_shape=jax.ShapeDtypeStruct((B_pad, 1), jnp.float32),
        grid_spec=pltpu.PrefetchScalarGridSpec(
            num_scalar_prefetch=1,
            grid=(k_tiles,),
            in_specs=[
                pl.BlockSpec(memory_space=pl.ANY),               # hidden_states stays in HBM
                pl.BlockSpec((tk, H), lambda k, offs: (k, 0)),   # pooler W: streamed K-tiles (bf16)
                pl.BlockSpec((1, H), lambda k, offs: (0, 0)),    # pooler bias (invariant)
                pl.BlockSpec((1, H), lambda k, offs: (0, 0)),    # classifier w row (invariant)
                pl.BlockSpec((1, 1), lambda k, offs: (0, 0)),    # classifier bias (invariant)
            ],
            out_specs=pl.BlockSpec((B_pad, 1), lambda k, offs: (0, 0)),
            scratch_shapes=[
                pltpu.VMEM((B_pad, H), jnp.float32),             # gathered CLS rows (DMA dst)
                pltpu.VMEM((B_pad, H), jnp.bfloat16),            # bf16 CLS copy for MXU
                pltpu.VMEM((B_pad, H), jnp.float32),             # f32 accumulator
                pltpu.SemaphoreType.DMA((B,)),                   # one sem per row DMA
            ],
        ),
        # K is a reduction axis (output block resident across it) -> "arbitrary".
        compiler_params=pltpu.CompilerParams(dimension_semantics=("arbitrary",)),
    )(
        offsets,
        hidden_states,
        w_pool.astype(jnp.bfloat16),                 # bf16 weight stream; f32 accumulation in-kernel
        b_pool.reshape(1, H).astype(jnp.float32),
        w_cls.reshape(1, H).astype(jnp.float32),     # (H, 1) -> (1, H) row for VPU reduction
        b_cls.reshape(1, 1).astype(jnp.float32),
    )

    # Drop batch padding, then the .squeeze(-1) from the PyTorch module.
    return out[:B, 0]


def _reference(hidden_states, prompt_lens, w_pool, b_pool, w_cls, b_cls):
    offsets = jnp.concatenate(
        [jnp.zeros((1,), jnp.int32), jnp.cumsum(prompt_lens.astype(jnp.int32))[:-1]]
    )
    cls = hidden_states[offsets]                               # [B, H]
    pooled = jnp.tanh(cls @ w_pool + b_pool)                   # [B, H]
    logits = pooled @ w_cls + b_cls                            # [B, 1]
    return jax.nn.sigmoid(logits)[:, 0]                        # [B]


if __name__ == "__main__":
    key = jax.random.PRNGKey(0)

    def run_case(H, k_tile):
        k_hs, k_wp, k_bp, k_wc, k_bc = jax.random.split(jax.random.fold_in(key, H), 5)
        prompt_lens = jnp.array([5, 3], dtype=jnp.int32)       # B = 2 sequences
        T = int(prompt_lens.sum())                             # total packed tokens = 8

        hidden_states = jax.random.normal(k_hs, (T, H), dtype=jnp.float32)
        # Deterministic synthetic params (BertPooler dense + classifier Linear(H, 1)).
        w_pool = jax.random.normal(k_wp, (H, H), dtype=jnp.float32) * 0.05
        b_pool = jax.random.normal(k_bp, (H,), dtype=jnp.float32) * 0.05
        w_cls = jax.random.normal(k_wc, (H, 1), dtype=jnp.float32) * 0.05
        b_cls = jax.random.normal(k_bc, (1,), dtype=jnp.float32) * 0.05

        scores = cross_encoding_pooler(hidden_states, prompt_lens,
                                       w_pool, b_pool, w_cls, b_cls, k_tile=k_tile)
        scores = jax.block_until_ready(scores)

        ref = _reference(hidden_states, prompt_lens, w_pool, b_pool, w_cls, b_cls)
        assert scores.shape == (prompt_lens.shape[0],)
        # bf16 weight stream -> tolerance relaxed vs. the pure-f32 reference (per review).
        assert jnp.allclose(scores, ref, atol=2e-2, rtol=2e-2), (scores, ref)

    # Lane-aligned H with 2 K-tiles: exercises the streamed-weight accumulation path.
    run_case(H=256, k_tile=128)
    # Tiny, non-128 H: single full-extent weight block fallback.
    run_case(H=32, k_tile=None)

    print("KERNEL_OK")
</pallas_src>

<mosaic_0001>
module attributes {stable_mosaic.version = 11 : i64} {
  func.func @_cross_encoding_pooler_kernel(%arg0: i32, %arg1: memref<2xi32, #tpu.memory_space<smem>>, %arg2: memref<8x256xf32, #tpu.memory_space<any>>, %arg3: memref<128x256xbf16, #tpu.memory_space<vmem>>, %arg4: memref<1x256xf32, #tpu.memory_space<vmem>>, %arg5: memref<1x256xf32, #tpu.memory_space<vmem>>, %arg6: memref<1x1xf32, #tpu.memory_space<vmem>>, %arg7: memref<8x1xf32, #tpu.memory_space<vmem>>, %arg8: memref<8x256xf32, #tpu.memory_space<vmem>>, %arg9: memref<8x256xbf16, #tpu.memory_space<vmem>>, %arg10: memref<8x256xf32, #tpu.memory_space<vmem>>, %arg11: memref<2x!tpu.dma_semaphore, #tpu.memory_space<semaphore_mem>>) attributes {dimension_semantics = [#tpu.dimension_semantics<arbitrary>], iteration_bounds = array<i64: 2>, scalar_prefetch = 1 : i64, scratch_operands = 4 : i64, tpu.core_type = #tpu.core_type<tc>, window_params = [{}, {transform_indices = @transform_1, window_bounds = array<i64: 128, 256>}, {pipeline_mode = #tpu.pipeline_mode<synchronous>, transform_indices = @transform_2, window_bounds = array<i64: 1, 256>}, {pipeline_mode = #tpu.pipeline_mode<synchronous>, transform_indices = @transform_3, window_bounds = array<i64: 1, 256>}, {pipeline_mode = #tpu.pipeline_mode<synchronous>, transform_indices = @transform_4, window_bounds = array<i64: 1, 1>}, {pipeline_mode = #tpu.pipeline_mode<synchronous>, transform_indices = @transform_5, window_bounds = array<i64: 8, 1>}]} {
    %c0_i32 = arith.constant 0 : i32
    %0 = arith.cmpi eq, %arg0, %c0_i32 : i32
    %1 = arith.extui %0 : i1 to i32
    %c0_i32_0 = arith.constant 0 : i32
    %2 = arith.cmpi ne, %1, %c0_i32_0 : i32
    scf.if %2 {
      %cst_8 = arith.constant 0.000000e+00 : f32
      %15 = vector.broadcast %cst_8 : f32 to vector<8x256xf32>
      %c0_9 = arith.constant 0 : index
      %c0_10 = arith.constant 0 : index
      %16 = vector.load %arg10[%c0_9, %c0_10] : memref<8x256xf32, #tpu.memory_space<vmem>>, vector<8x256xf32>
      tpu.vector_store %arg10[%c0_9, %c0_10], %15 {strides = array<i32>} : memref<8x256xf32, #tpu.memory_space<vmem>>, vector<8x256xf32>,
      %cst_11 = arith.constant 0.000000e+00 : f32
      %17 = vector.broadcast %cst_11 : f32 to vector<6x256xf32>
      %c2 = arith.constant 2 : index
      %c0_12 = arith.constant 0 : index
      %18 = vector.load %arg8[%c2, %c0_12] : memref<8x256xf32, #tpu.memory_space<vmem>>, vector<6x256xf32>
      tpu.vector_store %arg8[%c2, %c0_12], %17 {strides = array<i32>} : memref<8x256xf32, #tpu.memory_space<vmem>>, vector<6x256xf32>,
      %c0_13 = arith.constant 0 : index
      %19 = memref.load %arg1[%c0_13] : memref<2xi32, #tpu.memory_space<smem>>
      %c7_i32 = arith.constant 7 : i32
      %20 = arith.minsi %19, %c7_i32 : i32
      %c0_i32_14 = arith.constant 0 : i32
      %c0_i32_15 = arith.constant 0 : i32
      %21 = tpu.memref_slice %arg2[%20, %c0_i32_15] : memref<8x256xf32, #tpu.memory_space<any>> -> memref<1x256xf32, #tpu.memory_space<any>>
      %c0_i32_16 = arith.constant 0 : i32
      %c0_i32_17 = arith.constant 0 : i32
      %22 = tpu.memref_slice %arg8[%c0_i32_16, %c0_i32_17] : memref<8x256xf32, #tpu.memory_space<vmem>> -> memref<1x256xf32, #tpu.memory_space<vmem>>
      %23 = tpu.memref_slice %arg11[%c0_i32_14] : memref<2x!tpu.dma_semaphore, #tpu.memory_space<semaphore_mem>> -> memref<1x!tpu.dma_semaphore, #tpu.memory_space<semaphore_mem>>
      %24 = tpu.memref_squeeze %23 : memref<1x!tpu.dma_semaphore, #tpu.memory_space<semaphore_mem>> -> memref<!tpu.dma_semaphore, #tpu.memory_space<semaphore_mem>>
      tpu.enqueue_dma source(%21 : memref<1x256xf32, #tpu.memory_space<any>>) target(%22 : memref<1x256xf32, #tpu.memory_space<vmem>>) target_semaphore(%24 : memref<!tpu.dma_semaphore, #tpu.memory_space<semaphore_mem>>)
      %c1 = arith.constant 1 : index
      %25 = memref.load %arg1[%c1] : memref<2xi32, #tpu.memory_space<smem>>
      %c7_i32_18 = arith.constant 7 : i32
      %26 = arith.minsi %25, %c7_i32_18 : i32
      %c1_i32_19 = arith.constant 1 : i32
      %c0_i32_20 = arith.constant 0 : i32
      %27 = tpu.memref_slice %arg2[%26, %c0_i32_20] : memref<8x256xf32, #tpu.memory_space<any>> -> memref<1x256xf32, #tpu.memory_space<any>>
      %c1_i32_21 = arith.constant 1 : i32
      %c0_i32_22 = arith.constant 0 : i32
      %28 = tpu.memref_slice %arg8[%c1_i32_21, %c0_i32_22] : memref<8x256xf32, #tpu.memory_space<vmem>> -> memref<1x256xf32, #tpu.memory_space<vmem>>
      %29 = tpu.memref_slice %arg11[%c1_i32_19] : memref<2x!tpu.dma_semaphore, #tpu.memory_space<semaphore_mem>> -> memref<1x!tpu.dma_semaphore, #tpu.memory_space<semaphore_mem>>
      %30 = tpu.memref_squeeze %29 : memref<1x!tpu.dma_semaphore, #tpu.memory_space<semaphore_mem>> -> memref<!tpu.dma_semaphore, #tpu.memory_space<semaphore_mem>>
      tpu.enqueue_dma source(%27 : memref<1x256xf32, #tpu.memory_space<any>>) target(%28 : memref<1x256xf32, #tpu.memory_space<vmem>>) target_semaphore(%30 : memref<!tpu.dma_semaphore, #tpu.memory_space<semaphore_mem>>)
      %c0_i32_23 = arith.constant 0 : i32
      %c0_i32_24 = arith.constant 0 : i32
      %31 = tpu.memref_slice %arg2[%20, %c0_i32_24] : memref<8x256xf32, #tpu.memory_space<any>> -> memref<1x256xf32, #tpu.memory_space<any>>
      %c0_i32_25 = arith.constant 0 : i32
      %c0_i32_26 = arith.constant 0 : i32
      %32 = tpu.memref_slice %arg8[%c0_i32_25, %c0_i32_26] : memref<8x256xf32, #tpu.memory_space<vmem>> -> memref<1x256xf32, #tpu.memory_space<vmem>>
      %33 = tpu.memref_slice %arg11[%c0_i32_23] : memref<2x!tpu.dma_semaphore, #tpu.memory_space<semaphore_mem>> -> memref<1x!tpu.dma_semaphore, #tpu.memory_space<semaphore_mem>>
      %34 = tpu.memref_squeeze %33 : memref<1x!tpu.dma_semaphore, #tpu.memory_space<semaphore_mem>> -> memref<!tpu.dma_semaphore, #tpu.memory_space<semaphore_mem>>
      tpu.wait_dma2 semaphore(%34 : memref<!tpu.dma_semaphore, #tpu.memory_space<semaphore_mem>>) src(%31 : memref<1x256xf32, #tpu.memory_space<any>>) dst(%32 : memref<1x256xf32, #tpu.memory_space<vmem>>)
      %c1_i32_27 = arith.constant 1 : i32
      %c0_i32_28 = arith.constant 0 : i32
      %35 = tpu.memref_slice %arg2[%26, %c0_i32_28] : memref<8x256xf32, #tpu.memory_space<any>> -> memref<1x256xf32, #tpu.memory_space<any>>
      %c1_i32_29 = arith.constant 1 : i32
      %c0_i32_30 = arith.constant 0 : i32
      %36 = tpu.memref_slice %arg8[%c1_i32_29, %c0_i32_30] : memref<8x256xf32, #tpu.memory_space<vmem>> -> memref<1x256xf32, #tpu.memory_space<vmem>>
      %37 = tpu.memref_slice %arg11[%c1_i32_27] : memref<2x!tpu.dma_semaphore, #tpu.memory_space<semaphore_mem>> -> memref<1x!tpu.dma_semaphore, #tpu.memory_space<semaphore_mem>>
      %38 = tpu.memref_squeeze %37 : memref<1x!tpu.dma_semaphore, #tpu.memory_space<semaphore_mem>> -> memref<!tpu.dma_semaphore, #tpu.memory_space<semaphore_mem>>
      tpu.wait_dma2 semaphore(%38 : memref<!tpu.dma_semaphore, #tpu.memory_space<semaphore_mem>>) src(%35 : memref<1x256xf32, #tpu.memory_space<any>>) dst(%36 : memref<1x256xf32, #tpu.memory_space<vmem>>)
      %c0_31 = arith.constant 0 : index
      %c0_32 = arith.constant 0 : index
      %39 = vector.load %arg8[%c0_31, %c0_32] : memref<8x256xf32, #tpu.memory_space<vmem>>, vector<8x256xf32>
      %40 = arith.truncf %39 : vector<8x256xf32> to vector<8x256xbf16>
      %c0_33 = arith.constant 0 : index
      %c0_34 = arith.constant 0 : index
      %41 = vector.load %arg9[%c0_33, %c0_34] : memref<8x256xbf16, #tpu.memory_space<vmem>>, vector<8x256xbf16>
      tpu.vector_store %arg9[%c0_33, %c0_34], %40 {strides = array<i32>} : memref<8x256xbf16, #tpu.memory_space<vmem>>, vector<8x256xbf16>,
    } else {
    }
    %c128_i32 = arith.constant 128 : i32
    %3 = arith.muli %arg0, %c128_i32 : i32
    %4 = tpu.assume_multiple %3, 128 : i32
    %c0 = arith.constant 0 : index
    %5 = arith.index_cast %4 : i32 to index
    %6 = vector.load %arg9[%c0, %5] : memref<8x256xbf16, #tpu.memory_space<vmem>>, vector<8x128xbf16>
    %c0_1 = arith.constant 0 : index
    %c0_2 = arith.constant 0 : index
    %7 = vector.load %arg10[%c0_1, %c0_2] : memref<8x256xf32, #tpu.memory_space<vmem>>, vector<8x256xf32>
    %c0_3 = arith.constant 0 : index
    %c0_4 = arith.constant 0 : index
    %8 = vector.load %arg3[%c0_3, %c0_4] : memref<128x256xbf16, #tpu.memory_space<vmem>>, vector<128x256xbf16>
    %cst = arith.constant dense<0.000000e+00> : vector<8x256xf32>
    %9 = tpu.matmul %6, %8, %cst {dimension_numbers = #tpu.dot_dimension_numbers<[1], [0], [0], [1], [0, 0, 1, 1], [], []>} : vector<8x128xbf16>, vector<128x256xbf16>, vector<8x256xf32> -> vector<8x256xf32>
    %10 = arith.addf %7, %9 : vector<8x256xf32>
    %c0_5 = arith.constant 0 : index
    %c0_6 = arith.constant 0 : index
    %11 = vector.load %arg10[%c0_5, %c0_6] : memref<8x256xf32, #tpu.memory_space<vmem>>, vector<8x256xf32>
    tpu.vector_store %arg10[%c0_5, %c0_6], %10 {strides = array<i32>} : memref<8x256xf32, #tpu.memory_space<vmem>>, vector<8x256xf32>,
    %c1_i32 = arith.constant 1 : i32
    %12 = arith.cmpi eq, %arg0, %c1_i32 : i32
    %13 = arith.extui %12 : i1 to i32
    %c0_i32_7 = arith.constant 0 : i32
    %14 = arith.cmpi ne, %13, %c0_i32_7 : i32
    scf.if %14 {
      %c0_8 = arith.constant 0 : index
      %c0_9 = arith.constant 0 : index
      %15 = vector.load %arg10[%c0_8, %c0_9] : memref<8x256xf32, #tpu.memory_space<vmem>>, vector<8x256xf32>
      %c0_10 = arith.constant 0 : index
      %c0_11 = arith.constant 0 : index
      %16 = vector.load %arg4[%c0_10, %c0_11] : memref<1x256xf32, #tpu.memory_space<vmem>>, vector<1x256xf32>
      %17 = vector.broadcast %16 : vector<1x256xf32> to vector<8x256xf32>
      %18 = arith.addf %15, %17 : vector<8x256xf32>
      %19 = math.tanh %18 : vector<8x256xf32>
      %c0_12 = arith.constant 0 : index
      %c0_13 = arith.constant 0 : index
      %20 = vector.load %arg5[%c0_12, %c0_13] : memref<1x256xf32, #tpu.memory_space<vmem>>, vector<1x256xf32>
      %21 = vector.broadcast %20 : vector<1x256xf32> to vector<8x256xf32>
      %22 = arith.mulf %19, %21 : vector<8x256xf32>
      %cst_14 = arith.constant dense<0.000000e+00> : vector<8xf32>
      %23 = vector.multi_reduction <add>, %22, %cst_14 [1] : vector<8x256xf32> to vector<8xf32>
      %24 = vector.shape_cast %23 : vector<8xf32> to vector<8x1xf32>
      %c0_15 = arith.constant 0 : index
      %c0_16 = arith.constant 0 : index
      %25 = vector.load %arg6[%c0_15, %c0_16] : memref<1x1xf32, #tpu.memory_space<vmem>>, vector<1x1xf32>
      %26 = vector.broadcast %25 : vector<1x1xf32> to vector<8x1xf32>
      %27 = arith.addf %24, %26 : vector<8x1xf32>
      %28 = arith.negf %27 : vector<8x1xf32>
      %29 = math.exp %28 : vector<8x1xf32>
      %cst_17 = arith.constant 1.000000e+00 : f32
      %30 = vector.broadcast %cst_17 : f32 to vector<8x1xf32>
      %31 = arith.addf %30, %29 : vector<8x1xf32>
      %32 = arith.divf %30, %31 : vector<8x1xf32>
      %c0_18 = arith.constant 0 : index
      %c0_19 = arith.constant 0 : index
      %33 = vector.load %arg7[%c0_18, %c0_19] : memref<8x1xf32, #tpu.memory_space<vmem>>, vector<8x1xf32>
      tpu.vector_store %arg7[%c0_18, %c0_19], %32 {strides = array<i32>} : memref<8x1xf32, #tpu.memory_space<vmem>>, vector<8x1xf32>,
    } else {
    }
    return
  }
  func.func @transform_1(%arg0: i32, %arg1: memref<2xi32, #tpu.memory_space<smem>>) -> (i32, i32) {
    %c0_i32 = arith.constant 0 : i32
    %c0_i32_0 = arith.constant 0 : i32
    return %arg0, %c0_i32 : i32, i32
  }
  func.func @transform_2(%arg0: i32, %arg1: memref<2xi32, #tpu.memory_space<smem>>) -> (i32, i32) {
    %c0_i32 = arith.constant 0 : i32
    %c0_i32_0 = arith.constant 0 : i32
    %c0_i32_1 = arith.constant 0 : i32
    return %c0_i32, %c0_i32_0 : i32, i32
  }
  func.func @transform_3(%arg0: i32, %arg1: memref<2xi32, #tpu.memory_space<smem>>) -> (i32, i32) {
    %c0_i32 = arith.constant 0 : i32
    %c0_i32_0 = arith.constant 0 : i32
    %c0_i32_1 = arith.constant 0 : i32
    return %c0_i32, %c0_i32_0 : i32, i32
  }
  func.func @transform_4(%arg0: i32, %arg1: memref<2xi32, #tpu.memory_space<smem>>) -> (i32, i32) {
    %c0_i32 = arith.constant 0 : i32
    %c0_i32_0 = arith.constant 0 : i32
    %c0_i32_1 = arith.constant 0 : i32
    return %c0_i32, %c0_i32_0 : i32, i32
  }
  func.func @transform_5(%arg0: i32, %arg1: memref<2xi32, #tpu.memory_space<smem>>) -> (i32, i32) {
    %c0_i32 = arith.constant 0 : i32
    %c0_i32_0 = arith.constant 0 : i32
    %c0_i32_1 = arith.constant 0 : i32
    return %c0_i32, %c0_i32_0 : i32, i32
  }
}

</mosaic_0001>

<bundles_post_ra>
// kernel: tpu_custom_call.1
= control target key start
LH: loop header
LB: loop body
LE: loop exit
PB: predicated region body
PF: predicated region fallthrough
CT: control target
= control target key end

     0   :  { %s1024_s0 = inlined_call_operand.vmem [shape: s32[2], index: 0, kind: input, shape index: {}]   ;;  %s1025_s1 = inlined_call_operand.hbm [shape: f32[8,256], index: 1, kind: input, shape index: {}]   ;;  %s1026_s2 = inlined_call_operand.hbm [shape: bf16[256,256], index: 2, kind: input, shape index: {}]   ;;  %s1027_s3 = inlined_call_operand.vmem [shape: f32[1,256], index: 3, kind: input, shape index: {}]   ;;  %s1028_s4 = inlined_call_operand.vmem [shape: f32[1,256], index: 4, kind: input, shape index: {}]   ;;  %s1029_s6 = inlined_call_operand.vmem [shape: f32[8,1], index: 6, kind: output, shape index: {}]   ;;  %s1030_s5 = inlined_call_operand.<no memory space> [shape: f32[1,1], index: 5, kind: input, shape index: {}]  }
   0x1   :  { %s11_s23 = sshll.u32 %s1024_s0, 4  ;;  %v15_v0 = vstv %s1030_s5  ;;  %s12_s23 = int_to_ptr.vmem [resolvable:$true] %s11_s23 }
   0x2   :  { %16 = vst [vmem:[#allocation8] sm:$0x1] %v15_v0  ;;  %s660_s26 = scalar_lea.vmem %s12_s23, 16  ;;  %p665_p1 = scmp.lt.s32.totalorder %s12_s23, %s12_s23 }
   0x3   :  { %p661_p0 = scmp.ne.s32.totalorder %s12_s23, %s660_s26  ;;  %p666_p2 = scmp.lt.s32.totalorder %s660_s26, %s660_s26 }
   0x5   :  { %p667_p3 = por %p666_p2, %p665_p1 }
   0x7   :  { %p668_p4 = pnand %p667_p3, %p661_p0 }
   0x9   :  { %671 = shalt.err (!%p668_p4)  }
   0xa   :  { %s792_s27 = smov [#allocation7]  }
   0xb   :  { %14 = dma.vmem_to_smem %s12_s23, 16, %s792_s27, [#allocation6] }
   0xc   :  { %766 = dma.done.wait [#allocation6], 16 }
   0xd   :  { %767 = vsyncadd [#allocation6], 4294967280 }
   0xe   :  { %18 = sfence }
   0xf   :  { %19 = vsyncpa [#allocation10], 0 }
  0x10   :  { %21 = vsyncpa [#allocation10 + $0x1], 0  ;;  %s843_s0 = smov 0   ;;  %s845_s28 = smov 0  }
  0x11   :  { %s847_s5 = smov 0   ;;  %s849_s29 = smov 0  }
  0x12 LB: > { %s862_s30 = sadd.s32 4294967295, %s790_s29   ;;  %s865_s7 = sadd.s32 1, %s790_s29   ;;  %s790_s29 = sphi %s849_s29, %s1039_s29   ;;  %s786_s5 = sphi %s847_s5, %s1038_s5   ;;  %s782_s28 = sphi %s845_s28, %s1037_s28   ;;  %s778_s0 = sphi %s843_s0, %s1036_s0  }
  0x13   : > { %s31_s8 = ssub.s32 %s790_s29, %s865_s7  ;;  %s34_s9 = sadd.s32 1, %s786_s5 }
  0x14   : > { %p32_p5 = scmp.eq.s32.totalorder %s31_s8, 0  ;;  %p41_p6 = scmp.ne.s32.totalorder %s786_s5, %s782_s28 }
  0x15   : > { %p42_p7 = scmp.eq.s32.totalorder %s790_s29, 0  ;;  %p47_p8 = scmp.ne.s32.totalorder %s782_s28, %s778_s0 }
  0x16   : > { %s875_s10 = scalar_select %p32_p5, %s786_s5, %s34_s9  }
  0x17   : > { %p43_p9 = por %p42_p7, %p41_p6  ;;  %p48_p10 = scmp.eq.s32.totalorder %s862_s30, 0 }
  0x18   : > { %p586_p11 = scmp.lt.s32.totalorder %s790_s29, 2  ;;  %s164_s12 = sand.u32 1, %s786_s5  }
  0x19   : > { %p879_p12 = por %p48_p10, %p47_p8  ;;  %s539_s13 = sshll.u32 %s164_s12, 7 }
  0x1a   : > { %s578_s14 = sshll.u32 %s790_s29, 11  ;;  %s168_s18 = scalar_lea.vmem [#allocation9], %s539_s13 }
  0x1b   : > { %s888_s17 = scalar_lea.hbm %s1026_s2, %s578_s14  ;;  %s176_s19 = sshll.u32 %s168_s18, 4  ;;  %s890_s19 = int_to_ptr.vmem [resolvable:$true] %s176_s19 }
  0x1c   : > { %p892_p13 = pnand %p586_p11, %p43_p9  ;;  %s897_s21 = scalar_lea.sflag [#allocation10], %s164_s12 }
  0x1d   : > { %s672_s22 = scalar_lea.hbm %s888_s17, 2048  ;;  %s677_s25 = scalar_lea.hbm %s1026_s2, 4096 }
  0x1e   : > { %p673_p1 = scmp.ne.s32.totalorder %s888_s17, %s672_s22  ;;  %p674_p2 = pneg %p892_p13 }
  0x1f   : > { %p678_p5 = scmp.lt.u32.totalorder %s888_s17, %s1026_s2  ;;  %p679_p6 = scmp.lt.u32.totalorder %s677_s25, %s672_s22 }
  0x20   : > { %p675_p3 = pnand %p674_p2, %p673_p1  ;;  %p681_p8 = scmp.lt.u32.totalorder %s672_s22, %s888_s17 }
  0x21   : > { %p680_p7 = por %p679_p6, %p678_p5 }
  0x22   : > { %p676_p4 = pneg %p675_p3 }
  0x23   : > { %p682_p9 = por %p681_p8, %p680_p7 }
  0x25   : > { %p683_p10 = pnand %p682_p9, %p676_p4 }
  0x27   : > { %686 = shalt.err (!%p683_p10)
}
  0x28   : > { %s687_s0 = scalar_lea.vmem %s890_s19, 2048  ;;  %s793_s8 = smov [#allocation9]  }
  0x29   : > { %p688_p11 = scmp.ne.s32.totalorder %s890_s19, %s687_s0  ;;  %s692_s9 = sshll.u32 %s793_s8, 4  ;;  %s693_s9 = int_to_ptr.vmem [resolvable:$false] %s692_s9 }
  0x2a   : > { %s694_s12 = scalar_lea.vmem %s693_s9, 4096  ;;  %p695_p0 = scmp.lt.s32.totalorder %s890_s19, %s693_s9 }
  0x2b   : > { %p690_p1 = pnand %p688_p11, %p674_p2  ;;  %p696_p5 = scmp.lt.s32.totalorder %s694_s12, %s687_s0 }
  0x2d   : > { %p691_p3 = pneg %p690_p1  ;;  %p697_p6 = por %p696_p5, %p695_p0 }
  0x2f   : > { %p698_p7 = pnand %p697_p6, %p691_p3 }
  0x31   : > { %701 = shalt.err (!%p698_p7)
}
  0x32   : > { %s794_s13 = smov 128   ;;  %s795_s14 = smov 8  }
  0x33   : > { %585 = dma.hbm_to_vmem [thread:$0]  (!%p892_p13), %s888_s17, 2048, %s890_s19, %s897_s21, %s794_s13, %s794_s13, %s795_s14  }
  0x34   : > { %p184_p2 = scmp.lt.s32.totalorder %s790_s29, 3  ;;  %p1034_p4 = scmp.ge.s32.totalorder %s790_s29, 1 }
  0x36   : > { %p185_p8 = pnand %p1034_p4, %p184_p2 }
  0x37   : > { %s190_s15 = sand.u32 (!%p185_p8), 1, %s782_s28  }
  0x38   : > { %188 = sbr.rel (%p185_p8) target bundleno = 577 (0x241), region = 36  ;;  %s544_s16 = sshll.u32 (!%p185_p8), %s190_s15, 7 }
  0x39   : > { %s191_s18 = scalar_lea.sflag (!%p185_p8), [#allocation10], %s190_s15  ;;  %s929_s22 = scalar_lea.vmem (!%p185_p8), [#allocation9], %s544_s16 }
  0x3f   : > { %769 = dma.done.wait (%p879_p12), %s191_s18, 2048  }
  0x40   : > { %771 = vsyncadd (%p879_p12), %s191_s18, 4294965248  ;;  %p545_p0 = scmp.ne.s32.totalorder %s862_s30, 0 }
  0x41   : > { %s224_s17 = sld [smem:[#allocation7]] (!%p545_p0)  ;;  %v796_v1 = vmov (!%p545_p0), 0.0   ;;  %s936_s29 = sld [smem:[#allocation7 + $0x1]] (!%p545_p0) }
  0x42   : > { %219 = sbr.rel (%p545_p0) target bundleno = 133 (0x85), region = 44  ;;  %222 = vst [vmem:[#allocation2] sm:$0xfc] (!%p545_p0), %v796_v1  ;;  %220 = vst [vmem:[#allocation4] sm:$0xff] (!%p545_p0), %v796_v1  ;;  %s797_s19 = smov (!%p545_p0), [#allocation2]  }
  0x43   : > { %221 = vst [vmem:[#allocation4 + $0x8] sm:$0xff] (!%p545_p0), %v796_v1  ;;  %223 = vst [vmem:[#allocation2 + $0x8] sm:$0xfc] (!%p545_p0), %v796_v1  ;;  %s234_s20 = sshll.u32 (!%p545_p0), %s797_s19, 4  ;;  %s704_s13 = scalar_lea.hbm (!%p545_p0), %s1025_s1, 256  ;;  %s938_s20 = int_to_ptr.vmem [resolvable:$true] %s234_s20 }
  0x47   : > { %p225_p13 = scmp.lt.s32.totalorder (!%p545_p0), %s224_s17, 7  ;;  %p239_p12 = scmp.lt.s32.totalorder (!%p545_p0), %s936_s29, 7 }
  0x49   : > { %s1041_s17 = smov (!%p225_p13, %s224_s17), 7 }
  0x4a   : > { %s227_s11 = sshrl.u32 %s1041_s17, 3  ;;  %s228_s21 = sand.u32 7, %s1041_s17  }
  0x4b   : > { %s546_s23 = sshll.u32 %s227_s11, 4 }
  0x4c   : > { %s230_s24 = sadd.s32 %s546_s23, %s228_s21 }
  0x4d   : > { %s547_s25 = sshll.u32 %s230_s24, 4 }
  0x4e   : > { %s232_s0 = scalar_lea.hbm %s1025_s1, %s547_s25 }
  0x4f   : > { %s702_s8 = scalar_lea.hbm %s232_s0, 32  ;;  %p705_p10 = scmp.lt.u32.totalorder %s232_s0, %s1025_s1 }
  0x50   : > { %p703_p9 = scmp.ne.s32.totalorder %s232_s0, %s702_s8  ;;  %p706_p11 = scmp.lt.u32.totalorder %s704_s13, %s702_s8 }
  0x51   : > { %p708_p3 = scmp.lt.u32.totalorder %s702_s8, %s232_s0 }
  0x52   : > { %p707_p1 = por %p706_p11, %p705_p10 }
  0x54   : > { %p709_p5 = por %p708_p3, %p707_p1 }
  0x56   : > { %p710_p6 = pnand %p709_p5, %p703_p9 }
  0x58   : > { %713 = shalt.err (!%p710_p6)  }
  0x59   : > { %s714_s17 = scalar_lea.vmem %s938_s20, 32  ;;  %s718_s19 = scalar_lea.vmem %s938_s20, 256 }
  0x5a   : > { %p715_p7 = scmp.ne.s32.totalorder %s938_s20, %s714_s17  ;;  %p719_p2 = scmp.lt.s32.totalorder %s938_s20, %s938_s20 }
  0x5b   : > { %p720_p4 = scmp.lt.s32.totalorder %s718_s19, %s714_s17 }
  0x5d   : > { %p721_p8 = por %p720_p4, %p719_p2 }
  0x5f   : > { %p722_p0 = pnand %p721_p8, %p715_p7 }
  0x61   : > { %725 = shalt.err (!%p722_p0)  }
  0x62   : > { %s1031_s11 = smov 128   ;;  %s799_s21 = smov 1  }
  0x63   : > { %237 = dma.hbm_to_vmem [thread:$0]  %s232_s0, 32, %s938_s20, [#allocation5], %s1031_s11, %s1031_s11, %s799_s21 }
  0x64   : > { %s1043_s29 = smov (!%p239_p12, %s936_s29), 7  ;;  %s800_s23 = smov [#allocation2 + $0x1]  }
  0x65   : > { %s250_s24 = sshll.u32 %s800_s23, 4  ;;  %s241_s25 = sshrl.u32 %s1043_s29, 3  ;;  %s251_s24 = int_to_ptr.vmem [resolvable:$true] %s250_s24 }
  0x66   : > { %s242_s26 = sand.u32 7, %s1043_s29   ;;  %s549_s27 = sshll.u32 %s241_s25, 4 }
  0x67   : > { %s244_s8 = sadd.s32 %s549_s27, %s242_s26 }
  0x68   : > { %s550_s9 = sshll.u32 %s244_s8, 4 }
  0x69   : > { %s246_s15 = scalar_lea.hbm %s1025_s1, %s550_s9 }
  0x6a   : > { %s726_s16 = scalar_lea.hbm %s246_s15, 32  ;;  %p729_p9 = scmp.lt.u32.totalorder %s246_s15, %s1025_s1 }
  0x6b   : > { %p727_p13 = scmp.ne.s32.totalorder %s246_s15, %s726_s16  ;;  %p730_p12 = scmp.lt.u32.totalorder %s704_s13, %s726_s16 }
  0x6c   : > { %p732_p11 = scmp.lt.u32.totalorder %s726_s16, %s246_s15 }
  0x6d   : > { %p731_p10 = por %p730_p12, %p729_p9 }
  0x6f   : > { %p733_p1 = por %p732_p11, %p731_p10 }
  0x71   : > { %p734_p3 = pnand %p733_p1, %p727_p13 }
  0x73   : > { %737 = shalt.err (!%p734_p3)  }
  0x74   : > { %s738_s29 = scalar_lea.vmem %s251_s24, 32  ;;  %p743_p6 = scmp.lt.s32.totalorder %s251_s24, %s938_s20 }
  0x75   : > { %p739_p5 = scmp.ne.s32.totalorder %s251_s24, %s738_s29  ;;  %p744_p7 = scmp.lt.s32.totalorder %s718_s19, %s738_s29 }
  0x77   : > { %p745_p2 = por %p744_p7, %p743_p6 }
  0x79   : > { %p746_p4 = pnand %p745_p2, %p739_p5 }
  0x7b   : > { %749 = shalt.err (!%p746_p4)  }
  0x7c   : > { %s1035_s23 = smov 128  }
  0x7d   : > { %253 = dma.hbm_to_vmem [thread:$0]  %s246_s15, 32, %s251_s24, [#allocation5 + $0x1], %s1035_s23, %s1035_s23, %s799_s21 }
  0x7e   : > { %772 = dma.done.wait [#allocation5], 32 }
  0x7f   : > { %773 = vsyncadd [#allocation5], 4294967264 }
  0x80   : > { %774 = dma.done.wait [#allocation5 + $0x1], 32 }
  0x81   : > { %775 = vsyncadd [#allocation5 + $0x1], 4294967264  ;;  %v259_v2 = vld [vmem:[#allocation2] sm:$0xff]  ;;  %v260_v3 = vld [vmem:[#allocation2 + $0x8] sm:$0xff] }
  0x82   : > { %v579_v4 = vpack.c.bf16 %v260_v3, %v259_v2 }
  0x84   : > { %269 = vst [vmem:[#allocation3] sm:$0xff] %v579_v4 }
  0x85 PF: > { %v628_v5 = vld [vmem:[%s929_s22 + $0x4] ss:$8 sps:$4 sm:$0xff]   ;;  %v630_v6 = vld [vmem:[%s929_s22] ss:$8 sps:$4 sm:$0xff]   ;;  %v801_v7 = vmov 0   ;;  %s552_s20 = sshll.u32 %s862_s30, 7 }
  0x86   : > { %406 = vmatprep.mubr.bf16.mxu0 %v801_v7  ;;  %374 = vmatprep.subr.bf16.mxu0 %v628_v5  ;;  %v631_v8 = vld [vmem:[%s929_s22 + $0x14] ss:$8 sps:$4 sm:$0xff]   ;;  %v633_v9 = vld [vmem:[%s929_s22 + $0x10] ss:$8 sps:$4 sm:$0xff]   ;;  %v634_v10 = vld [vmem:[%s929_s22 + $0x24] ss:$8 sps:$4 sm:$0xff]  }
  0x87   : > { %375 = vmatpush1.bf16.msra.mxu0 %v630_v6  ;;  %v636_v11 = vld [vmem:[%s929_s22 + $0x20] ss:$8 sps:$4 sm:$0xff]   ;;  %v637_v12 = vld [vmem:[%s929_s22 + $0x34] ss:$8 sps:$4 sm:$0xff]   ;;  %v639_v13 = vld [vmem:[%s929_s22 + $0x30] ss:$8 sps:$4 sm:$0xff]  }
  0x88   : > { %376 = vmatprep.subr.bf16.mxu0 %v631_v8  ;;  %v640_v14 = vld [vmem:[%s929_s22 + $0x44] ss:$8 sps:$4 sm:$0xff]   ;;  %v642_v15 = vld [vmem:[%s929_s22 + $0x40] ss:$8 sps:$4 sm:$0xff]   ;;  %v643_v16 = vld [vmem:[%s929_s22 + $0x54] ss:$8 sps:$4 sm:$0xff]  }
  0x89   : > { %v645_v17 = vld [vmem:[%s929_s22 + $0x50] ss:$8 sps:$4 sm:$0xff]   ;;  %v646_v18 = vld [vmem:[%s929_s22 + $0x64] ss:$8 sps:$4 sm:$0xff]   ;;  %s271_s13 = sshra.s32 %s552_s20, 7  ;;  %p570_p8 = scmp.ne.s32.totalorder %s862_s30, 1 }
  0x8a   : > { %v648_v19 = vld [vmem:[%s929_s22 + $0x60] ss:$8 sps:$4 sm:$0xff]   ;;  %v649_v20 = vld [vmem:[%s929_s22 + $0x74] ss:$8 sps:$4 sm:$0xff]   ;;  %s553_s19 = sshll.u32 %s271_s13, 2  ;;  %v427_v31 = vlaneseq (!%p570_p8)  ;;  %vm472_vm0 = vcmask (!%p570_p8), 7168  }
  0x8b   : > { %377 = vmatpush1.bf16.msra.mxu0 %v633_v9  ;;  %v651_v21 = vld [vmem:[%s929_s22 + $0x70] ss:$8 sps:$4 sm:$0xff]   ;;  %s274_s11 = scalar_lea.vmem [#allocation3], %s553_s19  ;;  %v571_v50 = vld [vmem:[#allocation8] ss:$0 sm:$0xff] (!%p570_p8) }
  0x8c   : > { %378 = vmatprep.subr.bf16.mxu0 %v634_v10  ;;  %v275_v22 = vld [vmem:[%s274_s11] sm:$0xf]  ;;  %v276_v23 = vld [vmem:[#allocation4] sm:$0xff]  ;;  %v428_v32 = vshrl.u32 (!%p570_p8), %v427_v31, 7 }
  0x8d   : > { %v277_v24 = vld [vmem:[#allocation4 + $0x8] sm:$0xff] }
  0x8e   : > { %v425_v33 = vld [vmem:[%s1027_s3] sm:$0x3] (!%p570_p8)  ;;  %v429_v34 = vsub.s32 (!%p570_p8), 0, %v428_v32  ;;  %v433_v35 = vsub.s32 (!%p570_p8), 1, %v428_v32 }
  0x8f   : > { %379 = vmatpush1.bf16.msra.mxu0 %v636_v11  ;;  %v441_v42 = vld [vmem:[%s1028_s4] sm:$0x3] (!%p570_p8) }
  0x90   : > { %380 = vmatprep.subr.bf16.mxu0 %v637_v12  ;;  %v430_v38 = vrot.slane (!%p570_p8), %v425_v33, %v429_v34  ;;  %v434_v39 = vrot.slane (!%p570_p8), %v425_v33, %v433_v35  ;;  %v446_v43 = vrot.slane (!%p570_p8), %v441_v42, %v429_v34  ;;  %v450_v44 = vrot.slane (!%p570_p8), %v441_v42, %v433_v35 }
  0x93   : > { %381 = vmatpush1.bf16.msra.mxu0 %v639_v13 }
  0x94   : > { %382 = vmatprep.subr.bf16.mxu0 %v640_v14 }
  0x97   : > { %383 = vmatpush1.bf16.msra.mxu0 %v642_v15 }
  0x98   : > { %384 = vmatprep.subr.bf16.mxu0 %v643_v16 }
  0x9b   : > { %385 = vmatpush1.bf16.msra.mxu0 %v645_v17 }
  0x9c   : > { %386 = vmatprep.subr.bf16.mxu0 %v646_v18 }
  0x9f   : > { %387 = vmatpush1.bf16.msra.mxu0 %v648_v19 }
  0xa0   : > { %388 = vmatprep.subr.bf16.mxu0 %v649_v20 }
  0xa3   : > { %389 = vmatpush1.bf16.msra.mxu0 %v651_v21 }
  0xa6   : > { %407 = vmatmul.mubr.bf16.vlgmr.msra.gmra.mrb[0].mxu0 %v275_v22 }
 0x177   : > { %422 = sbr.rel (%p570_p8) target bundleno = 577 (0x241), region = 48 }
 0x179   : > { %v408_v25 = vpop.f32.mrb[0].mxu0 }
 0x17a   : > { %v415_v26 = vadd.f32 %v408_v25, %v276_v23  ;;  %v410_v27 = vpop.f32.mrb[1].mxu0 }
 0x17b   : > { %v416_v28 = vadd.f32 %v410_v27, %v277_v24  ;;  %v412_v29 = vpop.f32.mrb[2].mxu0 }
 0x17c   : > { %417 = vst [vmem:[#allocation4] sm:$0xff] %v415_v26  ;;  %v413_v30 = vpop.f32.mrb[3].mxu0 }
 0x17d   : > { %418 = vst [vmem:[#allocation4 + $0x8] sm:$0xff] %v416_v28 }
 0x183   : > { %v423_v36 = vld [vmem:[#allocation4] sm:$0xff] }
 0x184   : > { %v424_v37 = vld [vmem:[#allocation4 + $0x8] sm:$0xff]  ;;  %v437_v40 = vadd.f32 %v430_v38, %v423_v36 }
 0x185   : > { %v438_v41 = vadd.f32 %v434_v39, %v424_v37 }
 0x186   : > { %652 = vtanh.f32 %v437_v40 }
 0x187   : > { %654 = vtanh.f32 %v438_v41 }
 0x190   : > { %v653_v45 = vpop.eup %652 }
 0x191   : > { %v655_v46 = vpop.eup %654  ;;  %v453_v47 = vmul.f32 %v653_v45, %v446_v43 }
 0x192   : > { %v454_v48 = vmul.f32 %v655_v46, %v450_v44 }
 0x194   : > { %v455_v49 = vadd.f32 %v454_v48, %v453_v47 }
 0x196   : > { %456 = vadd.xlane.f32.xlu0 %v455_v49 }
 0x223   : > { %v457_v51 = vpop.xlane.xlu0 %456 }
 0x224   : > { %v465_v52 = vadd.f32 %v571_v50, %v457_v51 }
 0x226   : > { %v572_v53 = vmul.f32 -1.442695, %v465_v52 }
 0x228   : > { %656 = vpow2.f32 %v572_v53 }
 0x232   : > { %v657_v54 = vpop.eup %656 }
 0x233   : > { %v469_v55 = vadd.f32 1.0, %v657_v54 }
 0x235   : > { %658 = vrcp.f32 %v469_v55 }
 0x23f   : > { %v659_v56 = vpop.eup %658 }
 0x240   : > { %473 = vst.msk [vmem:[%s1029_s6] sm:$0xff] %vm472_vm0, %v659_v56 }
 0x241 PF: > { %p24_p0 = scmp.ge.s32.totalorder %s865_s7, 4   ;;  %s1036_s0 = smov %s782_s28 }
 0x242   : > { %s1037_s28 = smov %s786_s5  ;;  %s1038_s5 = smov %s875_s10 }
 0x243   : > { %s1039_s29 = smov %s865_s7  ;;  %26 = sbr.rel (!%p24_p0) target bundleno = 18 (0x12), region = 86 }
 0x24a   :  { %485 = vsyncpa [#allocation10], 1 }
 0x24b   :  { %487 = vsyncpa [#allocation10 + $0x1], 1 }
 0x24c   :  { %488 = vsyncmov [#allocation5] }
 0x24f   :  { %s489_s27 = vpop.sfrf %488 }
 0x250   :  { %p575_p13 = scmp.ne.s32.totalorder %s489_s27, 0 }
 0x252   :  { %493 = shalt.err (%p575_p13)  }
 0x253   :  { %495 = vsyncmov [#allocation5 + $0x1] }
 0x256   :  { %s496_s8 = vpop.sfrf %495 }
 0x257   :  { %p576_p9 = scmp.ne.s32.totalorder %s496_s8, 0 }
 0x259   :  { %500 = shalt.err (%p576_p9)  }

</bundles_post_ra>
